<compile_context>
chip_gen: v5e
topology: v5e:2x2
jax: 0.10.0
libtpu: 0.0.40
codegen_flags: <defaults>
</compile_context>

<pallas_src>
import jax
import jax.numpy as jnp
from jax.experimental import pallas as pl
from jax.experimental.pallas import tpu as pltpu


def _round_up(x, m):
    return ((x + m - 1) // m) * m


# ---------------------------------------------------------------------------
# Kernel body: fc1 (no bias) -> ReLU -> fc2 (+ bias), fused, one batch tile
# per grid step. Weights stay resident in VMEM across the whole grid.
# ---------------------------------------------------------------------------
def _clip_2fc_kernel(x_ref, w1_ref, w2_ref, b2_ref, o_ref):
    x = x_ref[...]                                        # (TM, Kp) bf16
    h = jnp.dot(x, w1_ref[...],
                preferred_element_type=jnp.float32)       # (TM, Hp) f32 acc
    h = jnp.maximum(h, 0.0)                               # ReLU on f32 acc
    out = jnp.dot(h.astype(w2_ref.dtype), w2_ref[...],
                  preferred_element_type=jnp.float32)     # (TM, Np) f32 acc
    b2 = b2_ref[...]                                      # read/broadcast once
    o_ref[...] = (out + b2).astype(o_ref.dtype)


# ---------------------------------------------------------------------------
# One-time parameter preparation (hoisted out of the per-call path).
# ---------------------------------------------------------------------------
def prepare_clip_2fc_params(w1, w2, b2, compute_dtype=jnp.bfloat16):
    """w1: (hidden_dim, input_dim)  PyTorch layout, no bias
       w2: (output_dim, hidden_dim) PyTorch layout
       b2: (output_dim,)
    Transposes to (in, out), pads every feature dim to a multiple of 128
    (lane-dense), and casts matmul operands to bf16 for the MXU."""
    hidden_dim, input_dim = w1.shape
    output_dim = w2.shape[0]
    Kp = _round_up(input_dim, 128)
    Hp = _round_up(hidden_dim, 128)
    Np = _round_up(output_dim, 128)

    w1_t = jnp.zeros((Kp, Hp), compute_dtype).at[:input_dim, :hidden_dim].set(
        jnp.transpose(w1).astype(compute_dtype))
    w2_t = jnp.zeros((Hp, Np), compute_dtype).at[:hidden_dim, :output_dim].set(
        jnp.transpose(w2).astype(compute_dtype))
    b2_p = jnp.zeros((1, Np), jnp.float32).at[0, :output_dim].set(
        b2.astype(jnp.float32))

    return dict(w1=w1_t, w2=w2_t, b2=b2_p,
                input_dim=input_dim, hidden_dim=hidden_dim,
                output_dim=output_dim, compute_dtype=compute_dtype)


# ---------------------------------------------------------------------------
# VMEM budgeting: resident weights + double-buffered x/out tiles + intermediates.
# ---------------------------------------------------------------------------
def _vmem_bytes(tm, Kp, Hp, Np, wbytes):
    weights = (Kp * Hp + Hp * Np) * wbytes + Np * 4          # resident params
    tiles = 2 * tm * Kp * wbytes + 2 * tm * Np * 4           # double-buffered x / out
    interm = tm * Hp * 4 + tm * Hp * wbytes + tm * Np * 4    # h f32, h bf16, acc
    return 2 * weights + tiles + interm                      # conservative 2x on params


def _pick_tile_m(B, Kp, Hp, Np, wbytes, budget=48 << 20):
    # Large batch tiles amortize the ~0.35 us per-step overhead; shrink only if
    # the estimate would not fit the (v7x-safe) VMEM budget.
    tm = min(512, _round_up(B, 8))
    while tm > 8 and _vmem_bytes(tm, Kp, Hp, Np, wbytes) > budget:
        tm = max(8, _round_up(tm // 2, 8))
    return tm


# ---------------------------------------------------------------------------
# Forward wrapper.
# ---------------------------------------------------------------------------
def clip_2fc_forward(x, params):
    """x: (B, input_dim) float array. Returns (B, output_dim) f32."""
    B, input_dim = x.shape
    assert input_dim == params["input_dim"]
    output_dim = params["output_dim"]
    cdt = params["compute_dtype"]
    w1, w2, b2 = params["w1"], params["w2"], params["b2"]
    Kp, Hp = w1.shape
    Np = w2.shape[1]
    wbytes = jnp.dtype(cdt).itemsize

    TM = _pick_tile_m(B, Kp, Hp, Np, wbytes)
    Bp = _round_up(B, TM)

    # Per-call glue: pad batch + features to the lane-dense tile, cast for MXU.
    x_p = jnp.zeros((Bp, Kp), cdt).at[:B, :input_dim].set(x.astype(cdt))

    est = _vmem_bytes(TM, Kp, Hp, Np, wbytes)
    vmem_limit = None
    if est > (30 << 20):
        # v7x: 64 MiB physical / 32 MiB default scoped -> raise explicitly,
        # but stay under the physical ceiling.
        vmem_limit = min(int(est * 1.25), 60 << 20)

    out_p = pl.pallas_call(
        _clip_2fc_kernel,
        out_shape=jax.ShapeDtypeStruct((Bp, Np), jnp.float32),
        grid_spec=pltpu.PrefetchScalarGridSpec(
            num_scalar_prefetch=0,
            grid=(Bp // TM,),
            in_specs=[
                pl.BlockSpec((TM, Kp), lambda i: (i, 0)),   # batch tile (pipelined)
                pl.BlockSpec((Kp, Hp), lambda i: (0, 0)),   # resident weight 1
                pl.BlockSpec((Hp, Np), lambda i: (0, 0)),   # resident weight 2
                pl.BlockSpec((1, Np), lambda i: (0, 0)),    # resident bias
            ],
            out_specs=pl.BlockSpec((TM, Np), lambda i: (i, 0)),
        ),
        compiler_params=pltpu.CompilerParams(
            dimension_semantics=("parallel",),
            vmem_limit_bytes=vmem_limit),
    )(x_p, w1, w2, b2)

    # Slice away batch / lane padding.
    return out_p[:B, :output_dim]


if __name__ == "__main__":
    # Small shapes consistent with the module's forward.
    batch, input_dim, hidden_dim, output_dim = 8, 32, 64, 16

    key = jax.random.PRNGKey(0)
    kx, kw1, kw2, kb2 = jax.random.split(key, 4)

    x = jax.random.normal(kx, (batch, input_dim), dtype=jnp.float32)
    # Deterministic parameter init (synthetic — no checkpoint load).
    w1 = jax.random.normal(kw1, (hidden_dim, input_dim), dtype=jnp.float32) * 0.1
    w2 = jax.random.normal(kw2, (output_dim, hidden_dim), dtype=jnp.float32) * 0.1
    b2 = jax.random.normal(kb2, (output_dim,), dtype=jnp.float32) * 0.1

    params = prepare_clip_2fc_params(w1, w2, b2)   # one-time prep (transpose/pad/cast)
    out = clip_2fc_forward(x, params)
    out = jax.block_until_ready(out)

    # Pure-JAX f32 reference of the module forward.
    ref = jnp.maximum(x @ w1.T, 0.0) @ w2.T + b2
    assert out.shape == (batch, output_dim)
    # bf16 MXU inputs with f32 accumulation -> compare against the f32 reference
    # with a bf16-appropriate tolerance.
    err = float(jnp.max(jnp.abs(out - ref)))
    assert jnp.allclose(out, ref, atol=2e-2, rtol=2e-2), err

    print("KERNEL_OK")
</pallas_src>

<mosaic_0001>
module attributes {stable_mosaic.version = 11 : i64} {
  func.func @_clip_2fc_kernel(%arg0: i32, %arg1: memref<8x128xbf16, #tpu.memory_space<vmem>>, %arg2: memref<128x128xbf16, #tpu.memory_space<vmem>>, %arg3: memref<128x128xbf16, #tpu.memory_space<vmem>>, %arg4: memref<1x128xf32, #tpu.memory_space<vmem>>, %arg5: memref<8x128xf32, #tpu.memory_space<vmem>>) attributes {dimension_semantics = [#tpu.dimension_semantics<parallel>], iteration_bounds = array<i64: 1>, scalar_prefetch = 0 : i64, scratch_operands = 0 : i64, tpu.core_type = #tpu.core_type<tc>, window_params = [{transform_indices = @transform_0, window_bounds = array<i64: 8, 128>}, {pipeline_mode = #tpu.pipeline_mode<synchronous>, transform_indices = @transform_1, window_bounds = array<i64: 128, 128>}, {pipeline_mode = #tpu.pipeline_mode<synchronous>, transform_indices = @transform_2, window_bounds = array<i64: 128, 128>}, {pipeline_mode = #tpu.pipeline_mode<synchronous>, transform_indices = @transform_3, window_bounds = array<i64: 1, 128>}, {transform_indices = @transform_4, window_bounds = array<i64: 8, 128>}]} {
    %c0 = arith.constant 0 : index
    %c0_0 = arith.constant 0 : index
    %0 = vector.load %arg1[%c0, %c0_0] : memref<8x128xbf16, #tpu.memory_space<vmem>>, vector<8x128xbf16>
    %c0_1 = arith.constant 0 : index
    %c0_2 = arith.constant 0 : index
    %1 = vector.load %arg2[%c0_1, %c0_2] : memref<128x128xbf16, #tpu.memory_space<vmem>>, vector<128x128xbf16>
    %cst = arith.constant dense<0.000000e+00> : vector<8x128xf32>
    %2 = tpu.matmul %0, %1, %cst {dimension_numbers = #tpu.dot_dimension_numbers<[1], [0], [0], [1], [0, 0, 1, 1], [], []>} : vector<8x128xbf16>, vector<128x128xbf16>, vector<8x128xf32> -> vector<8x128xf32>
    %cst_3 = arith.constant 0.000000e+00 : f32
    %3 = vector.broadcast %cst_3 : f32 to vector<8x128xf32>
    %4 = arith.maximumf %2, %3 : vector<8x128xf32>
    %5 = arith.truncf %4 : vector<8x128xf32> to vector<8x128xbf16>
    %c0_4 = arith.constant 0 : index
    %c0_5 = arith.constant 0 : index
    %6 = vector.load %arg3[%c0_4, %c0_5] : memref<128x128xbf16, #tpu.memory_space<vmem>>, vector<128x128xbf16>
    %cst_6 = arith.constant dense<0.000000e+00> : vector<8x128xf32>
    %7 = tpu.matmul %5, %6, %cst_6 {dimension_numbers = #tpu.dot_dimension_numbers<[1], [0], [0], [1], [0, 0, 1, 1], [], []>} : vector<8x128xbf16>, vector<128x128xbf16>, vector<8x128xf32> -> vector<8x128xf32>
    %c0_7 = arith.constant 0 : index
    %c0_8 = arith.constant 0 : index
    %8 = vector.load %arg4[%c0_7, %c0_8] : memref<1x128xf32, #tpu.memory_space<vmem>>, vector<1x128xf32>
    %9 = vector.broadcast %8 : vector<1x128xf32> to vector<8x128xf32>
    %10 = arith.addf %7, %9 : vector<8x128xf32>
    %c0_9 = arith.constant 0 : index
    %c0_10 = arith.constant 0 : index
    %11 = vector.load %arg5[%c0_9, %c0_10] : memref<8x128xf32, #tpu.memory_space<vmem>>, vector<8x128xf32>
    tpu.vector_store %arg5[%c0_9, %c0_10], %10 {strides = array<i32>} : memref<8x128xf32, #tpu.memory_space<vmem>>, vector<8x128xf32>,
    return
  }
  func.func @transform_0(%arg0: i32) -> (i32, i32) {
    %c0_i32 = arith.constant 0 : i32
    %c0_i32_0 = arith.constant 0 : i32
    return %arg0, %c0_i32 : i32, i32
  }
  func.func @transform_1(%arg0: i32) -> (i32, i32) {
    %c0_i32 = arith.constant 0 : i32
    %c0_i32_0 = arith.constant 0 : i32
    %c0_i32_1 = arith.constant 0 : i32
    return %c0_i32, %c0_i32_0 : i32, i32
  }
  func.func @transform_2(%arg0: i32) -> (i32, i32) {
    %c0_i32 = arith.constant 0 : i32
    %c0_i32_0 = arith.constant 0 : i32
    %c0_i32_1 = arith.constant 0 : i32
    return %c0_i32, %c0_i32_0 : i32, i32
  }
  func.func @transform_3(%arg0: i32) -> (i32, i32) {
    %c0_i32 = arith.constant 0 : i32
    %c0_i32_0 = arith.constant 0 : i32
    %c0_i32_1 = arith.constant 0 : i32
    return %c0_i32, %c0_i32_0 : i32, i32
  }
  func.func @transform_4(%arg0: i32) -> (i32, i32) {
    %c0_i32 = arith.constant 0 : i32
    %c0_i32_0 = arith.constant 0 : i32
    return %arg0, %c0_i32 : i32, i32
  }
}

</mosaic_0001>

<bundles_post_ra>
// kernel: tpu_custom_call.1
= control target key start
LH: loop header
LB: loop body
LE: loop exit
PB: predicated region body
PF: predicated region fallthrough
CT: control target
= control target key end

     0   :  { %9 = vsyncpa [#allocation3], 0  ;;  %s478_s0 = inlined_call_operand.hbm [shape: bf16[8,128], index: 0, kind: input, shape index: {}]   ;;  %s479_s1 = inlined_call_operand.hbm [shape: bf16[128,128], index: 1, kind: input, shape index: {}]   ;;  %s480_s2 = inlined_call_operand.hbm [shape: bf16[128,128], index: 2, kind: input, shape index: {}]   ;;  %s481_s3 = inlined_call_operand.vmem [shape: f32[1,128], index: 3, kind: input, shape index: {}]   ;;  %s482_s4 = inlined_call_operand.hbm [shape: f32[8,128], index: 4, kind: output, shape index: {}]  }
   0x1   :  { %10 = vsyncpa [#allocation6], 0  ;;  %s27_s17 = sshll.u32 %s479_s1, 4  ;;  %s28_s17 = int_to_ptr.hbm [resolvable:$true] %s27_s17 }
   0x2   :  { %11 = vsyncpa [#allocation4], 0  ;;  %s432_s18 = smov [#allocation5]   ;;  %s17_s22 = sshll.u32 %s478_s0, 4  ;;  %s18_s22 = int_to_ptr.hbm [resolvable:$true] %s17_s22 }
   0x3   :  { %s29_s19 = sshll.u32 %s432_s18, 4  ;;  %s433_s23 = smov 64   ;;  %s30_s19 = int_to_ptr.vmem [resolvable:$true] %s29_s19 }
   0x4   :  { %s434_s24 = smov 4   ;;  %s435_s25 = smov [#allocation2]  }
   0x5   :  { %35 = dma.hbm_to_vmem [thread:$0]  %s28_s17, 1024, %s30_s19, [#allocation6], %s433_s23, %s433_s23, %s434_s24  }
   0x6   :  { %s19_s26 = sshll.u32 %s435_s25, 4  ;;  %s40_s29 = sshll.u32 %s480_s2, 4  ;;  %s20_s26 = int_to_ptr.vmem [resolvable:$true] %s19_s26  ;;  %s41_s29 = int_to_ptr.hbm [resolvable:$true] %s40_s29 }
   0x7   :  { %22 = dma.hbm_to_vmem [thread:$0]  %s18_s22, 64, %s20_s26, [#allocation3]  }
   0x8   :  { %s436_s1 = smov [#allocation7]  }
   0x9   :  { %s42_s30 = sshll.u32 %s436_s1, 4  ;;  %s43_s30 = int_to_ptr.vmem [resolvable:$true] %s42_s30 }
   0xa   :  { %48 = dma.hbm_to_vmem [thread:$0]  %s41_s29, 1024, %s43_s30, [#allocation6], %s433_s23, %s433_s23, %s434_s24  }
   0xb   :  { %426 = dma.done.wait [#allocation3], 64  }
   0xc   :  { %427 = vsyncadd [#allocation3], 4294967232 }
   0xd   :  { %428 = dma.done.wait [#allocation6], 2048  }
   0xe   :  { %429 = vsyncadd [#allocation6], 4294965248  ;;  %v314_v0 = vld [vmem:[#allocation5 + $0x38] sm:$0xff]  ;;  %v313_v1 = vld [vmem:[#allocation5 + $0x30] sm:$0xff]  ;;  %s437_s5 = smov [#allocation8]   ;;  %s232_s9 = sshll.u32 %s482_s4, 4  ;;  %s233_s9 = int_to_ptr.hbm [resolvable:$true] %s232_s9 }
   0xf   :  { %128 = vmatpush.bf16.msra.mxu0 %v314_v0  ;;  %v322_v2 = vld [vmem:[#allocation7 + $0x38] sm:$0xff]  ;;  %v321_v3 = vld [vmem:[#allocation7 + $0x30] sm:$0xff]  ;;  %v312_v4 = vld [vmem:[#allocation5 + $0x28] sm:$0xff]  ;;  %s230_s6 = sshll.u32 %s437_s5, 4  ;;  %s231_s6 = int_to_ptr.vmem [resolvable:$true] %s230_s6 }
  0x10   :  { %211 = vmatpush.bf16.msra.mxu1 %v322_v2  ;;  %v320_v5 = vld [vmem:[#allocation7 + $0x28] sm:$0xff]  ;;  %v311_v6 = vld [vmem:[#allocation5 + $0x20] sm:$0xff]  ;;  %v310_v8 = vld [vmem:[#allocation5 + $0x18] sm:$0xff] }
  0x11   :  { %v319_v7 = vld [vmem:[#allocation7 + $0x20] sm:$0xff]  ;;  %v318_v9 = vld [vmem:[#allocation7 + $0x18] sm:$0xff]  ;;  %v309_v10 = vld [vmem:[#allocation5 + $0x10] sm:$0xff] }
  0x12   :  { %v317_v11 = vld [vmem:[#allocation7 + $0x10] sm:$0xff]  ;;  %v308_v12 = vld [vmem:[#allocation5 + $0x8] sm:$0xff]  ;;  %v307_v14 = vld [vmem:[#allocation5] sm:$0xff] }
  0x13   :  { %129 = vmatpush.bf16.msra.mxu0 %v313_v1  ;;  %v316_v13 = vld [vmem:[#allocation7 + $0x8] sm:$0xff]  ;;  %v63_v15 = vld [vmem:[#allocation2] sm:$0xf]  ;;  %v315_v16 = vld [vmem:[#allocation7] sm:$0xff] }
  0x14   :  { %212 = vmatpush.bf16.msra.mxu1 %v321_v3  ;;  %v329_v21 = vld [vmem:[%s481_s3] ss:$0 sm:$0xff] }
  0x17   :  { %130 = vmatpush.bf16.msra.mxu0 %v312_v4 }
  0x18   :  { %213 = vmatpush.bf16.msra.mxu1 %v320_v5 }
  0x1b   :  { %131 = vmatpush.bf16.msra.mxu0 %v311_v6 }
  0x1c   :  { %214 = vmatpush.bf16.msra.mxu1 %v319_v7 }
  0x1f   :  { %132 = vmatpush.bf16.msra.mxu0 %v310_v8 }
  0x20   :  { %215 = vmatpush.bf16.msra.mxu1 %v318_v9 }
  0x23   :  { %133 = vmatpush.bf16.msra.mxu0 %v309_v10 }
  0x24   :  { %216 = vmatpush.bf16.msra.mxu1 %v317_v11 }
  0x27   :  { %134 = vmatpush.bf16.msra.mxu0 %v308_v12 }
  0x28   :  { %217 = vmatpush.bf16.msra.mxu1 %v316_v13 }
  0x2b   :  { %135 = vmatpush.bf16.msra.mxu0 %v307_v14 }
  0x2c   :  { %218 = vmatpush.bf16.msra.mxu1 %v315_v16 }
  0x2e   :  { %136 = vmatmul.bf16.vlgmr.msra.gmra.mxu0 %v63_v15 }
  0xab   :  { %v137_v17 = vpop.f32.mrf.mxu0 }
  0xac   :  { %v141_v18 = vmax.f32 %v137_v17, 0.0 }
  0xae   :  { %v142_v19 = vpack.c.bf16 %v141_v18, %v141_v18 }
  0xb0   :  { %219 = vmatmul.bf16.vlgmr.msra.gmra.mxu1 %v142_v19 }
  0xb3   :  { %v139_v20 = vpop.f32.mrf.mxu0 }
 0x12d   :  { %v220_v22 = vpop.f32.mrf.mxu1 }
 0x12e   :  { %v221_v23 = vadd.f32 %v329_v21, %v220_v22 }
 0x130   :  { %224 = vst [vmem:[#allocation8] sm:$0xff] %v221_v23 }
 0x131   :  { %235 = dma.vmem_to_hbm [thread:$0]  %s231_s6, 128, %s233_s9, [#allocation4]  }
 0x135   :  { %v222_v24 = vpop.f32.mrf.mxu1 }
 0x136   :  { %430 = dma.done.wait [#allocation4], 128  }
 0x137   :  { %431 = vsyncadd [#allocation4], 4294967168 }
 0x138   :  { %240 = vsyncpa [#allocation3], 1 }
 0x139   :  { %241 = vsyncpa [#allocation6], 1 }
 0x13a   :  { %242 = vsyncpa [#allocation4], 1 }

</bundles_post_ra>
